<compile_context>
chip_gen: v7x
topology: tpu7x:2x2x1
jax: 0.10.0
libtpu: 0.0.40
codegen_flags: <defaults>
</compile_context>

<pallas_src>
import math
import functools

import jax
import jax.numpy as jnp
from jax import lax
from jax.experimental import pallas as pl
from jax.experimental.pallas import tpu as pltpu


def _make_pe(d_model: int, max_len: int = 1250) -> jnp.ndarray:
    """Sinusoidal table identical to the torch buffer (shape [max_len, d_model])."""
    position = jnp.arange(0, max_len, dtype=jnp.float32)[:, None]
    div_term = jnp.exp(
        jnp.arange(0, d_model, 2, dtype=jnp.float32) * (-math.log(10000.0) / d_model)
    )
    ang = position * div_term
    pe = jnp.zeros((max_len, d_model), dtype=jnp.float32)
    pe = pe.at[:, 0::2].set(jnp.sin(ang))
    pe = pe.at[:, 1::2].set(jnp.cos(ang))
    return pe


def _round_up(x: int, m: int) -> int:
    return ((x + m - 1) // m) * m


def _padded_bytes_f32(rows: int, cols: int) -> int:
    """VMEM footprint of one f32 [rows, cols] slab after (8,128) tile padding."""
    return _round_up(max(rows, 1), 8) * _round_up(max(cols, 1), 128) * 4


def _vmem_capacity_bytes() -> int:
    try:
        return int(pltpu.get_tpu_info().vmem_capacity_bytes)
    except Exception:
        return 64 << 20  # conservative default = v7x per-TensorCore VMEM


def _select_tb(batch: int, per_batch_hbm: int, per_batch_vmem: int,
               enc_vmem: int, usable_vmem: int) -> int:
    """Batches per grid step: big enough for efficient DMAs, small enough for VMEM
    and for >=2 grid steps (both v7x TensorCores) whenever batch >= 2."""
    headroom = 2 << 20
    # in + out, double-buffered => 4 copies of the per-batch stream slab.
    tb_vmem = max(1, (usable_vmem - enc_vmem - headroom) // (4 * per_batch_vmem))
    # Target ~8 MiB of pipelined traffic per step (4 * TB * per_batch_hbm).
    tb_target = max(1, (2 << 20) // max(per_batch_hbm, 1))
    tb = min(batch, tb_target, tb_vmem)
    if batch >= 2:
        tb = min(tb, -(-batch // 2))   # ceil(B/2): grid >= 2 steps for megacore
    return max(1, int(tb))


def _pos_encoding_kernel(lens_ref,                               # SMEM [B] int32
                         lang_ref, frames_ref, actions_ref,      # stream tiles (VMEM)
                         enc_ref,                                # constant enc (VMEM)
                         lang_out, frames_out, actions_out,      # outputs (VMEM)
                         *, batch, tb, l_lang, l_frames, l_act, enc_len, unroll):
    b0 = pl.program_id(0) * tb

    # lang: encoding is batch independent -> one broadcast add over the tile.
    lang_out[...] = lang_ref[...] + enc_ref[:l_lang, :]

    max_sf = jnp.int32(enc_len - l_frames)
    max_sa = jnp.int32(enc_len - l_act)

    def body(i, carry):
        # Clamp the batch index so a ragged tail tile never reads lens OOB
        # (its corresponding output rows are dropped by Pallas anyway).
        bi = jnp.minimum(b0 + i, jnp.int32(batch - 1))
        lens_b = lens_ref[bi]
        # start clamped exactly like the torch loop (min with enc_len - L),
        # plus a lower clamp at 0 guarding against negative lens.
        sf = jnp.clip(lens_b, jnp.int32(0), max_sf)
        enc_f = enc_ref[pl.ds(sf, l_frames), :]
        frames_out[i] = frames_ref[i] + enc_f
        if l_act == l_frames:
            # Same length -> same clamp -> same slice; reuse it (halves the
            # dynamic sublane-offset slices / enc VMEM reads per batch).
            actions_out[i] = actions_ref[i] + enc_f
        else:
            sa = jnp.clip(lens_b, jnp.int32(0), max_sa)
            actions_out[i] = actions_ref[i] + enc_ref[pl.ds(sa, l_act), :]
        return carry

    lax.fori_loop(0, tb, body, 0, unroll=unroll)


@functools.lru_cache(maxsize=None)
def _build_pos_encoding_call(batch, l_lang, l_frames, l_act, d, enc_len,
                             tb, vmem_limit, unroll, dtype_name):
    """Build (and cache) the pallas_call for one static configuration."""
    dtype = jnp.dtype(dtype_name)
    kernel = functools.partial(
        _pos_encoding_kernel,
        batch=batch, tb=tb, l_lang=l_lang, l_frames=l_frames, l_act=l_act,
        enc_len=enc_len, unroll=unroll)

    def stream_spec(length):
        # Last two block dims equal the full array dims -> legal for any TB,
        # lane-dense whenever d % 128 == 0.
        return pl.BlockSpec((tb, length, d), lambda b, lens: (b, 0, 0))

    in_specs = [
        stream_spec(l_lang),
        stream_spec(l_frames),
        stream_spec(l_act),
        # Constant encoding table: same block every step (no re-DMA).
        pl.BlockSpec((enc_len, d), lambda b, lens: (0, 0)),
    ]
    out_specs = [stream_spec(l_lang), stream_spec(l_frames), stream_spec(l_act)]
    out_shapes = (
        jax.ShapeDtypeStruct((batch, l_lang, d), dtype),
        jax.ShapeDtypeStruct((batch, l_frames, d), dtype),
        jax.ShapeDtypeStruct((batch, l_act, d), dtype),
    )
    grid_spec = pltpu.PrefetchScalarGridSpec(
        num_scalar_prefetch=1,
        grid=(pl.cdiv(batch, tb),),
        in_specs=in_specs,
        out_specs=out_specs,
    )
    return pl.pallas_call(
        kernel,
        out_shape=out_shapes,
        grid_spec=grid_spec,
        compiler_params=pltpu.CompilerParams(
            dimension_semantics=("parallel",),
            vmem_limit_bytes=int(vmem_limit),
        ),
    )


def pos_encoding_forward(lang, frames, actions, lens_lang, pe_table):
    """Pallas implementation of PosEncoding.forward (pos=None path)."""
    B, L_lang, D = lang.shape
    Bf, L_frames, Df = frames.shape
    Ba, L_act, Da = actions.shape
    assert (Bf, Df) == (B, D) and (Ba, Da) == (B, D)
    enc_len = L_lang + L_frames
    assert L_frames <= enc_len and L_act <= enc_len
    assert pe_table.shape[0] >= enc_len and pe_table.shape[1] == D, (
        "pe_table must cover lang.shape[1] + frames.shape[1] rows of width d_model")

    # Scale the (constant) table once here; it is tiny vs the streams.
    scale = jnp.float32(1.0 / math.sqrt(D))
    enc2d = (pe_table[:enc_len, :].astype(jnp.float32) * scale).astype(lang.dtype)

    # ---- adaptive batch-tile selection & VMEM budget -----------------------
    per_batch_hbm = (L_lang + L_frames + L_act) * D * 4          # raw streamed bytes
    per_batch_vmem = (_padded_bytes_f32(L_lang, D)
                      + _padded_bytes_f32(L_frames, D)
                      + _padded_bytes_f32(L_act, D))             # tile-padded VMEM
    enc_vmem = 2 * _padded_bytes_f32(enc_len, D)                 # constant, dbl-buffered
    cap = _vmem_capacity_bytes()
    usable = max(32 << 20, (cap * 3) // 4)   # ~48 MiB on v7x, ~96 MiB on v5e/v6e
    TB = _select_tb(B, per_batch_hbm, per_batch_vmem, enc_vmem, usable)
    footprint = 4 * TB * per_batch_vmem + enc_vmem + (2 << 20)
    vmem_limit = max(32 << 20, min(usable, footprint))           # >=32 MiB (v5e default is 16)

    # Unroll the per-batch loop only when its slab is a few vregs.
    unroll = (L_frames + L_act) * _round_up(D, 128) <= 8 * 1024

    call = _build_pos_encoding_call(
        B, L_lang, L_frames, L_act, D, enc_len,
        TB, int(vmem_limit), bool(unroll), jnp.dtype(lang.dtype).name)
    return call(lens_lang.astype(jnp.int32), lang, frames, actions, enc2d)


def pos_encoding_reference(lang, frames, actions, lens_lang, pe_table):
    """Pure-JAX reference mirroring the torch code (pos=None path)."""
    B, L_lang, D = lang.shape
    _, L_frames, _ = frames.shape
    _, L_act, _ = actions.shape
    enc_len = L_lang + L_frames
    enc = pe_table[:enc_len, :] / math.sqrt(D)

    lang_out = lang + enc[None, :L_lang, :]
    frames_out, actions_out = [], []
    for i in range(B):
        s_f = min(int(lens_lang[i]), enc_len - L_frames)
        frames_out.append(frames[i] + enc[s_f:s_f + L_frames])
        s_a = min(int(lens_lang[i]), enc_len - L_act)
        actions_out.append(actions[i] + enc[s_a:s_a + L_act])
    return lang_out, jnp.stack(frames_out), jnp.stack(actions_out)


if __name__ == "__main__":
    def run_case(B, D, L_lang, L_frames, L_act, lens):
        key = jax.random.PRNGKey(0)
        k1, k2, k3 = jax.random.split(key, 3)
        lang = jax.random.normal(k1, (B, L_lang, D), dtype=jnp.float32)
        frames = jax.random.normal(k2, (B, L_frames, D), dtype=jnp.float32)
        actions = jax.random.normal(k3, (B, L_act, D), dtype=jnp.float32)
        lens_lang = jnp.array(lens, dtype=jnp.int32)
        pe_table = _make_pe(D, max_len=1250)

        outs = jax.block_until_ready(
            pos_encoding_forward(lang, frames, actions, lens_lang, pe_table))
        refs = pos_encoding_reference(lang, frames, actions, lens_lang, pe_table)
        for o, r in zip(outs, refs):
            assert o.shape == r.shape and o.dtype == r.dtype
            assert jnp.allclose(o, r, atol=1e-5, rtol=1e-5), "mismatch vs reference"

    # Small case: D < 128, second entry exercises the end_idx clamp branch.
    run_case(B=2, D=32, L_lang=8, L_frames=6, L_act=6, lens=[3, 10])
    # Lane-dense case (D % 128 == 0), ragged batch tail (B % TB != 0),
    # L_act != L_frames branch, >=2 grid steps (megacore split), clamp branch.
    run_case(B=5, D=128, L_lang=16, L_frames=12, L_act=8, lens=[0, 5, 16, 20, 3])

    print("KERNEL_OK")
</pallas_src>

<mosaic_0001>
module attributes {stable_mosaic.version = 11 : i64} {
  func.func @_pos_encoding_kernel(%arg0: i32, %arg1: memref<2xi32, #tpu.memory_space<smem>>, %arg2: memref<1x8x32xf32, #tpu.memory_space<vmem>>, %arg3: memref<1x6x32xf32, #tpu.memory_space<vmem>>, %arg4: memref<1x6x32xf32, #tpu.memory_space<vmem>>, %arg5: memref<14x32xf32, #tpu.memory_space<vmem>>, %arg6: memref<1x8x32xf32, #tpu.memory_space<vmem>>, %arg7: memref<1x6x32xf32, #tpu.memory_space<vmem>>, %arg8: memref<1x6x32xf32, #tpu.memory_space<vmem>>) attributes {dimension_semantics = [#tpu.dimension_semantics<parallel>], iteration_bounds = array<i64: 2>, scalar_prefetch = 1 : i64, scratch_operands = 0 : i64, tpu.core_type = #tpu.core_type<tc>, window_params = [{transform_indices = @transform_0, window_bounds = array<i64: 1, 8, 32>}, {transform_indices = @transform_1, window_bounds = array<i64: 1, 6, 32>}, {transform_indices = @transform_2, window_bounds = array<i64: 1, 6, 32>}, {pipeline_mode = #tpu.pipeline_mode<synchronous>, transform_indices = @transform_3, window_bounds = array<i64: 14, 32>}, {transform_indices = @transform_4, window_bounds = array<i64: 1, 8, 32>}, {transform_indices = @transform_5, window_bounds = array<i64: 1, 6, 32>}, {transform_indices = @transform_6, window_bounds = array<i64: 1, 6, 32>}]} {
    %c1_i32 = arith.constant 1 : i32
    %0 = arith.muli %arg0, %c1_i32 : i32
    %c0 = arith.constant 0 : index
    %c0_0 = arith.constant 0 : index
    %c0_1 = arith.constant 0 : index
    %1 = vector.load %arg2[%c0, %c0_0, %c0_1] : memref<1x8x32xf32, #tpu.memory_space<vmem>>, vector<1x8x32xf32>
    %c0_2 = arith.constant 0 : index
    %c0_3 = arith.constant 0 : index
    %2 = vector.load %arg5[%c0_2, %c0_3] : memref<14x32xf32, #tpu.memory_space<vmem>>, vector<8x32xf32>
    %3 = vector.shape_cast %2 : vector<8x32xf32> to vector<1x8x32xf32>
    %4 = arith.addf %1, %3 : vector<1x8x32xf32>
    %c0_4 = arith.constant 0 : index
    %c0_5 = arith.constant 0 : index
    %c0_6 = arith.constant 0 : index
    %5 = vector.load %arg6[%c0_4, %c0_5, %c0_6] : memref<1x8x32xf32, #tpu.memory_space<vmem>>, vector<1x8x32xf32>
    tpu.vector_store %arg6[%c0_4, %c0_5, %c0_6], %4 {strides = array<i32>} : memref<1x8x32xf32, #tpu.memory_space<vmem>>, vector<1x8x32xf32>,
    %c8_i32 = arith.constant 8 : i32
    %c0_i32 = arith.constant 0 : i32
    %6 = arith.addi %0, %c0_i32 : i32
    %c1_i32_7 = arith.constant 1 : i32
    %7 = arith.minsi %6, %c1_i32_7 : i32
    %8 = arith.index_cast %7 : i32 to index
    %9 = memref.load %arg1[%8] : memref<2xi32, #tpu.memory_space<smem>>
    %c0_i32_8 = arith.constant 0 : i32
    %10 = arith.maxsi %c0_i32_8, %9 : i32
    %11 = arith.minsi %c8_i32, %10 : i32
    %12 = arith.index_cast %11 : i32 to index
    %c0_9 = arith.constant 0 : index
    %13 = vector.load %arg5[%12, %c0_9] : memref<14x32xf32, #tpu.memory_space<vmem>>, vector<6x32xf32>
    %14 = arith.index_cast %c0_i32 : i32 to index
    %c0_10 = arith.constant 0 : index
    %c0_11 = arith.constant 0 : index
    %15 = vector.load %arg3[%14, %c0_10, %c0_11] : memref<1x6x32xf32, #tpu.memory_space<vmem>>, vector<1x6x32xf32>
    %16 = vector.shape_cast %15 : vector<1x6x32xf32> to vector<6x32xf32>
    %17 = arith.addf %16, %13 : vector<6x32xf32>
    %18 = arith.index_cast %c0_i32 : i32 to index
    %c0_12 = arith.constant 0 : index
    %c0_13 = arith.constant 0 : index
    %19 = vector.load %arg7[%18, %c0_12, %c0_13] : memref<1x6x32xf32, #tpu.memory_space<vmem>>, vector<1x6x32xf32>
    %20 = vector.shape_cast %19 : vector<1x6x32xf32> to vector<6x32xf32>
    %21 = vector.shape_cast %17 : vector<6x32xf32> to vector<1x6x32xf32>
    tpu.vector_store %arg7[%18, %c0_12, %c0_13], %21 {strides = array<i32>} : memref<1x6x32xf32, #tpu.memory_space<vmem>>, vector<1x6x32xf32>,
    %22 = arith.index_cast %c0_i32 : i32 to index
    %c0_14 = arith.constant 0 : index
    %c0_15 = arith.constant 0 : index
    %23 = vector.load %arg4[%22, %c0_14, %c0_15] : memref<1x6x32xf32, #tpu.memory_space<vmem>>, vector<1x6x32xf32>
    %24 = vector.shape_cast %23 : vector<1x6x32xf32> to vector<6x32xf32>
    %25 = arith.addf %24, %13 : vector<6x32xf32>
    %26 = arith.index_cast %c0_i32 : i32 to index
    %c0_16 = arith.constant 0 : index
    %c0_17 = arith.constant 0 : index
    %27 = vector.load %arg8[%26, %c0_16, %c0_17] : memref<1x6x32xf32, #tpu.memory_space<vmem>>, vector<1x6x32xf32>
    %28 = vector.shape_cast %27 : vector<1x6x32xf32> to vector<6x32xf32>
    %29 = vector.shape_cast %25 : vector<6x32xf32> to vector<1x6x32xf32>
    tpu.vector_store %arg8[%26, %c0_16, %c0_17], %29 {strides = array<i32>} : memref<1x6x32xf32, #tpu.memory_space<vmem>>, vector<1x6x32xf32>,
    %c1_i32_18 = arith.constant 1 : i32
    return
  }
  func.func @transform_0(%arg0: i32, %arg1: memref<2xi32, #tpu.memory_space<smem>>) -> (i32, i32, i32) {
    %c0_i32 = arith.constant 0 : i32
    %c0_i32_0 = arith.constant 0 : i32
    %c0_i32_1 = arith.constant 0 : i32
    return %arg0, %c0_i32, %c0_i32_0 : i32, i32, i32
  }
  func.func @transform_1(%arg0: i32, %arg1: memref<2xi32, #tpu.memory_space<smem>>) -> (i32, i32, i32) {
    %c0_i32 = arith.constant 0 : i32
    %c0_i32_0 = arith.constant 0 : i32
    %c0_i32_1 = arith.constant 0 : i32
    return %arg0, %c0_i32, %c0_i32_0 : i32, i32, i32
  }
  func.func @transform_2(%arg0: i32, %arg1: memref<2xi32, #tpu.memory_space<smem>>) -> (i32, i32, i32) {
    %c0_i32 = arith.constant 0 : i32
    %c0_i32_0 = arith.constant 0 : i32
    %c0_i32_1 = arith.constant 0 : i32
    return %arg0, %c0_i32, %c0_i32_0 : i32, i32, i32
  }
  func.func @transform_3(%arg0: i32, %arg1: memref<2xi32, #tpu.memory_space<smem>>) -> (i32, i32) {
    %c0_i32 = arith.constant 0 : i32
    %c0_i32_0 = arith.constant 0 : i32
    %c0_i32_1 = arith.constant 0 : i32
    return %c0_i32, %c0_i32_0 : i32, i32
  }
  func.func @transform_4(%arg0: i32, %arg1: memref<2xi32, #tpu.memory_space<smem>>) -> (i32, i32, i32) {
    %c0_i32 = arith.constant 0 : i32
    %c0_i32_0 = arith.constant 0 : i32
    %c0_i32_1 = arith.constant 0 : i32
    return %arg0, %c0_i32, %c0_i32_0 : i32, i32, i32
  }
  func.func @transform_5(%arg0: i32, %arg1: memref<2xi32, #tpu.memory_space<smem>>) -> (i32, i32, i32) {
    %c0_i32 = arith.constant 0 : i32
    %c0_i32_0 = arith.constant 0 : i32
    %c0_i32_1 = arith.constant 0 : i32
    return %arg0, %c0_i32, %c0_i32_0 : i32, i32, i32
  }
  func.func @transform_6(%arg0: i32, %arg1: memref<2xi32, #tpu.memory_space<smem>>) -> (i32, i32, i32) {
    %c0_i32 = arith.constant 0 : i32
    %c0_i32_0 = arith.constant 0 : i32
    %c0_i32_1 = arith.constant 0 : i32
    return %arg0, %c0_i32, %c0_i32_0 : i32, i32, i32
  }
}

</mosaic_0001>

<bundles_post_ra>
// kernel: tpu_custom_call.1
= control target key start
LH: loop header
LB: loop body
LE: loop exit
PB: predicated region body
PF: predicated region fallthrough
CT: control target
= control target key end

     0   :  { %s818_s0 = inlined_call_operand.vmem [shape: s32[2], index: 0, kind: input, shape index: {}]   ;;  %s819_s1 = inlined_call_operand.vmem [shape: f32[2,8,32], index: 1, kind: input, shape index: {}]   ;;  %s820_s2 = inlined_call_operand.vmem [shape: f32[2,6,32], index: 2, kind: input, shape index: {}]   ;;  %s821_s3 = inlined_call_operand.vmem [shape: f32[2,6,32], index: 3, kind: input, shape index: {}]   ;;  %s822_s4 = inlined_call_operand.vmem [shape: f32[14,32], index: 4, kind: input, shape index: {}]   ;;  %s823_s5 = inlined_call_operand.hbm [shape: f32[2,8,32], index: 5, kind: output, shape index: {0}]   ;;  %s824_s6 = inlined_call_operand.vmem [shape: f32[2,6,32], index: 6, kind: output, shape index: {1}]   ;;  %s825_s7 = inlined_call_operand.vmem [shape: f32[2,6,32], index: 7, kind: output, shape index: {2}]  }
   0x1   :  { %826 = sst [smem:[#allocation8_spill]] %s819_s1  ;;  %s13_s26 = sshll.u32 %s818_s0, 4  ;;  %s14_s26 = int_to_ptr.vmem [resolvable:$true] %s13_s26 }
   0x2   :  { %s551_s27 = scalar_lea.vmem %s14_s26, 16  ;;  %p556_p1 = scmp.lt.s32.totalorder %s14_s26, %s14_s26 }
   0x3   :  { %p552_p0 = scmp.ne.s32.totalorder %s14_s26, %s551_s27  ;;  %p557_p2 = scmp.lt.s32.totalorder %s551_s27, %s551_s27 }
   0x5   :  { %p558_p3 = por %p557_p2, %p556_p1 }
   0x7   :  { %p559_p4 = pnand %p558_p3, %p552_p0 }
   0x9   :  { %562 = shalt.err (!%p559_p4)  }
   0xa   :  { %s629_s28 = smov [#allocation3]  }
   0xb   :  { %16 = dma.vmem_to_smem %s14_s26, 16, %s629_s28, [#allocation2] }
   0xc   :  { %607 = dma.done.wait [#allocation2], 16 }
   0xd   :  { %608 = vsyncadd [#allocation2], 4294967280 }
   0xe   :  { %18 = sfence }
   0xf   :  { %19 = vsyncpa [#allocation5], 0 }
  0x10   :  { %21 = vsyncpa [#allocation5 + $0x1], 0  ;;  %s674_s29 = smov 0   ;;  %s676_s30 = smov 0  }
  0x11   :  { %s678_s0 = smov 0   ;;  %s680_s8 = smov 0  }
  0x12 LB: > { %s695_s9 = sadd.s32 4294967295, %s627_s8   ;;  %s490_s10 = sadd.s32 4294967294, %s627_s8   ;;  %s627_s8 = sphi %s680_s8, %s833_s8   ;;  %s623_s0 = sphi %s678_s0, %s832_s0   ;;  %s619_s30 = sphi %s676_s30, %s831_s30   ;;  %s615_s29 = sphi %s674_s29, %s830_s29  }
  0x13   : > { %s699_s11 = sadd.s32 1, %s627_s8   ;;  %s133_s12 = sadd.s32 1, %s623_s0 }
  0x14   : > { %s130_s13 = ssub.s32 %s627_s8, %s699_s11  ;;  %p143_p5 = scmp.ne.s32.totalorder %s623_s0, %s619_s30 }
  0x15   : > { %p131_p6 = scmp.eq.s32.totalorder %s130_s13, 0  ;;  %p144_p7 = scmp.eq.s32.totalorder %s695_s9, 1 }
  0x16   : > { %p149_p8 = scmp.ne.s32.totalorder %s619_s30, %s615_s29  ;;  %p150_p9 = scmp.eq.s32.totalorder %s490_s10, 1 }
  0x17   : > { %s710_s14 = scalar_select %p131_p6, %s623_s0, %s133_s12  }
  0x18   : > { %p712_p10 = por %p144_p7, %p143_p5  ;;  %p716_p11 = por %p150_p9, %p149_p8 }
  0x19   : > { %p493_p12 = scmp.ge.s32.totalorder %s627_s8, 1  ;;  %p244_p13 = scmp.lt.s32.totalorder %s627_s8, 3 }
  0x1b   : > { %p245_p0 = pnand %p493_p12, %p244_p13 }
  0x1c   : > { %s274_s17 = sand.u32 (!%p245_p0), 1, %s619_s30   ;;  %p289_p1 = scmp.lt.s32.totalorder (!%p245_p0), %s695_s9, 1  ;;  %v310_v0 = vld [vmem:[%s822_s4] sm:$0xff] (!%p245_p0)  ;;  %vm312_vm0 = vcmask (!%p245_p0), 261120  }
  0x1d   : > { %248 = sbr.rel (%p245_p0) target bundleno = 72 (0x48), region = 36  ;;  %s494_s18 = sshll.u32 (!%p245_p0), %s274_s17, 3 }
  0x1e   : > { %s506_s20 = sshll.u32 (!%p245_p0), %s695_s9, 7  ;;  %s829_s1 = sld [smem:[#allocation8_spill]] (!%p245_p0) }
  0x1f   : > { %s276_s28 = scalar_lea.vmem (!%p245_p0), [#allocation4], %s494_s18  ;;  %s742_s13 = scalar_lea.hbm (!%p245_p0), %s823_s5, %s506_s20 }
  0x20   : > { %s630_s10 = smov (!%p245_p0), [#allocation4]  }
  0x21   : > { %s567_s20 = sshll.u32 (!%p245_p0), %s630_s10, 4  ;;  %s568_s20 = int_to_ptr.vmem [resolvable:$false] %s567_s20 }
  0x24   : > { %s290_s19 = scalar_select %p289_p1, %s695_s9, 1 }
  0x25   : > { %s352_s9 = sshll.u32 %s276_s28, 4  ;;  %s737_s9 = int_to_ptr.vmem [resolvable:$true] %s352_s9 }
  0x26   : > { %s726_s21 = sshll.u32 %s290_s19, 3  ;;  %s731_s24 = sld [smem:[#allocation3 + %s290_s19]] }
  0x27   : > { %s292_s27 = scalar_lea.vmem %s829_s1, %s726_s21  ;;  %s296_s23 = scalar_lea.vmem %s820_s2, %s726_s21 }
  0x28   : > { %v309_v1 = vld [vmem:[%s292_s27] sm:$0xff]  ;;  %s300_s26 = scalar_lea.vmem %s821_s3, %s726_s21  ;;  %s331_s27 = scalar_lea.sflag [#allocation5], %s274_s17 }
  0x29   : > { %v311_v2 = vadd.f32 %v310_v0, %v309_v1  ;;  %s563_s1 = scalar_lea.vmem %s737_s9, 128  ;;  %p570_p7 = scmp.lt.s32.totalorder %s737_s9, %s568_s20 }
  0x2a   : > { %p564_p4 = scmp.ne.s32.totalorder %s737_s9, %s563_s1 }
  0x2b   : > { %313 = vst.msk [vmem:[%s276_s28] sm:$0xff] %vm312_vm0, %v311_v2  ;;  %s569_s28 = scalar_lea.vmem %s568_s20, 256 }
  0x2c   : > { %p317_p2 = scmp.gt.s32.totalorder %s731_s24, 0  ;;  %p500_p3 = scmp.lt.s32.totalorder %s731_s24, 8 }
  0x2d   : > { %p565_p5 = pnand %p564_p4, %p712_p10  ;;  %p571_p8 = scmp.lt.s32.totalorder %s569_s28, %s563_s1 }
  0x2f   : > { %p566_p6 = pneg %p565_p5  ;;  %p572_p9 = por %p571_p8, %p570_p7 }
  0x31   : > { %p573_p12 = pnand %p572_p9, %p566_p6 }
  0x33   : > { %576 = shalt.err (!%p573_p12)
}
  0x34   : > { %s577_s17 = scalar_lea.hbm %s742_s13, 128  ;;  %s581_s22 = scalar_lea.hbm %s823_s5, 256 }
  0x35   : > { %p578_p13 = scmp.ne.s32.totalorder %s742_s13, %s577_s17  ;;  %p582_p4 = scmp.lt.u32.totalorder %s742_s13, %s823_s5 }
  0x36   : > { %p583_p5 = scmp.lt.u32.totalorder %s581_s22, %s577_s17  ;;  %p585_p7 = scmp.lt.u32.totalorder %s577_s17, %s742_s13 }
  0x37   : > { %p579_p0 = pnand %p578_p13, %p712_p10 }
  0x38   : > { %p584_p6 = por %p583_p5, %p582_p4 }
  0x39   : > { %p580_p1 = pneg %p579_p0 }
  0x3a   : > { %p586_p8 = por %p585_p7, %p584_p6 }
  0x3c   : > { %p587_p9 = pnand %p586_p8, %p580_p1 }
  0x3e   : > { %590 = shalt.err (!%p587_p9)
}
  0x3f   : > { %511 = dma.vmem_to_hbm [thread:$0]  (%p712_p10), %s737_s9, 128, %s742_s13, %s331_s27   ;;  %v323_v3 = vld [vmem:[%s296_s23] sm:$0x3f]  ;;  %vm325_vm1 = vcmask 259072  }
  0x40   : > { %s318_s1 = scalar_select %p317_p2, %s731_s24, 0  ;;  %v327_v4 = vld [vmem:[%s300_s26] sm:$0x3f] }
  0x41   : > { %s304_s13 = scalar_lea.vmem %s824_s6, %s726_s21  ;;  %s308_s18 = scalar_lea.vmem %s825_s7, %s726_s21 }
  0x42   : > { %s835_s1 = smov (!%p500_p3, %s318_s1), 8 }
  0x43   : > { %s321_s19 = scalar_lea.vmem %s822_s4, %s835_s1 }
  0x44   : > { %v322_v5 = vld [vmem:[%s321_s19] sm:$0x3f] }
  0x45   : > { %v324_v6 = vadd.f32 %v323_v3, %v322_v5  ;;  %v328_v7 = vadd.f32 %v327_v4, %v322_v5 }
  0x47   : > { %326 = vst.msk [vmem:[%s304_s13] sm:$0x3f] %vm325_vm1, %v324_v6  ;;  %329 = vst.msk [vmem:[%s308_s18] sm:$0x3f] %vm325_vm1, %v328_v7 }
  0x48 PF: > { %p517_p10 = scmp.ge.s32.totalorder %s627_s8, 2  ;;  %s370_s23 = sand.u32 1, %s615_s29  }
  0x49   : > { %s371_s26 = scalar_lea.sflag [#allocation5], %s370_s23 }
  0x4a   : > { %p514_p2 = pnand %p517_p10, %p716_p11 }
  0x4c   : > { %610 = dma.done.wait (!%p514_p2), %s371_s26, 128  }
  0x4d   : > { %612 = vsyncadd (!%p514_p2), %s371_s26, 4294967168  ;;  %p24_p3 = scmp.ge.s32.totalorder %s699_s11, 4   ;;  %s830_s29 = smov %s619_s30 }
  0x4e   : > { %s831_s30 = smov %s623_s0  ;;  %s832_s0 = smov %s710_s14 }
  0x4f   : > { %s833_s8 = smov %s699_s11  ;;  %26 = sbr.rel (!%p24_p3) target bundleno = 18 (0x12), region = 102 }
  0x56   :  { %390 = vsyncpa [#allocation5], 1 }
  0x57   :  { %392 = vsyncpa [#allocation5 + $0x1], 1 }

</bundles_post_ra>
